<compile_context>
chip_gen: v5e
topology: v5e:2x2
jax: 0.10.0
libtpu: 0.0.40
codegen_flags: <defaults>
</compile_context>

<pallas_src>
import functools

import numpy as np
import jax
import jax.numpy as jnp
from jax.experimental import pallas as pl
from jax.experimental.pallas import tpu as pltpu


# ---------------------------------------------------------------------------
# Kernel: normalize all bands of one sample (VPU, f32) and resize them with a
# single bf16 MXU matmul against the per-sample flip-variant Kron matrix.
# ---------------------------------------------------------------------------
def _norm_resize_kernel(flip_ref, low_ref, scale_ref, img_ref, kron_ref, out_ref):
    del flip_ref  # only consumed by the kron index_map (scalar prefetch)
    # img_ref   : (n_pad, H_in*W_in)            f32  current sample (bands padded)
    # low_ref   : (n_pad, 1)                    f32  mean - 2*std  (lane broadcast)
    # scale_ref : (n_pad, 1)                    f32  1 / (4*std)
    # kron_ref  : (H_in*W_in, H_out*W_out)      bf16 selected flip variant
    # out_ref   : (n_pad, H_out*W_out)          f32  lane-dense store
    x = (img_ref[...] - low_ref[...]) * scale_ref[...]
    x = jnp.clip(x, 0.0, 1.0)  # clamp BEFORE resize (matches torch module)
    out_ref[...] = jnp.dot(
        x.astype(kron_ref.dtype), kron_ref[...],
        preferred_element_type=jnp.float32)


# ---------------------------------------------------------------------------
# Host-side (numpy, cached) construction of the bilinear resize matrices.
# ---------------------------------------------------------------------------
def _interp_matrix_np(n_out: int, n_in: int) -> np.ndarray:
    """Bilinear interpolation matrix (n_out, n_in), align_corners=True."""
    if n_in == 1:
        return np.ones((n_out, 1), np.float32)
    if n_out == 1:
        m = np.zeros((1, n_in), np.float32)
        m[0, 0] = 1.0
        return m
    src = np.arange(n_out, dtype=np.float64) * ((n_in - 1) / (n_out - 1))
    i0 = np.clip(np.floor(src).astype(np.int64), 0, n_in - 2)
    i1 = i0 + 1
    w1 = (src - i0).astype(np.float32)
    w0 = (1.0 - w1).astype(np.float32)
    m = np.zeros((n_out, n_in), np.float32)
    rows = np.arange(n_out)
    np.add.at(m, (rows, i0), w0)
    np.add.at(m, (rows, i1), w1)
    return m


@functools.lru_cache(maxsize=None)
def _kron_resize_variants(h_out: int, w_out: int, h_in: int, w_in: int) -> np.ndarray:
    """(4, H_in*W_in, H_out*W_out) f32 resize matrices; variant = hflip + 2*vflip.

    out_flat = x_flat @ K_f, where flipping the resized output is equivalent to
    reversing the rows of Ry (vflip) / Rx (hflip) before forming the Kronecker.
    """
    ry = _interp_matrix_np(h_out, h_in)          # (H_out, H_in)
    rx = _interp_matrix_np(w_out, w_in)          # (W_out, W_in)
    variants = []
    for v in range(2):
        for h in range(2):
            ry_f = ry[::-1] if v else ry
            rx_f = rx[::-1] if h else rx
            variants.append(np.kron(ry_f, rx_f).T)   # (H_in*W_in, H_out*W_out)
    return np.ascontiguousarray(np.stack(variants, axis=0).astype(np.float32))


# ---------------------------------------------------------------------------
# Batched core: one pallas_call for B samples, grid over the batch axis.
# ---------------------------------------------------------------------------
@functools.partial(jax.jit, static_argnames=("size",))
def _augment_batched(images, mean, std, flip_idx, *, size):
    """images: (B, C, H_in, W_in); flip_idx: (B,) int32 in [0,4).

    Returns (B, C, size, size) float32 (normalized + resized + flipped).
    """
    b, n_bands, h_in, w_in = images.shape
    hw_in = h_in * w_in
    hw_out = size * size
    n_pad = ((n_bands + 7) // 8) * 8          # pad bands to a sublane multiple

    # Guard the dense-Kron formulation against large resize targets
    # (per-variant bf16 slab must stay well under v7x's 64 MiB VMEM).
    if hw_in * hw_out * 2 > 8 * 1024 * 1024:
        # TODO(synk): tile the output-pixel axis (grid over hw_out) or switch to
        # the separable Ry @ x @ Rx^T two-matmul form for large resize targets.
        raise NotImplementedError("resize target too large for dense-Kron kernel")

    images = images.astype(jnp.float32)
    mean = mean.astype(jnp.float32)
    std = std.astype(jnp.float32)

    # Per-band normalization constants, padded and shaped for lane broadcast.
    low = jnp.pad(mean - 2.0 * std, (0, n_pad - n_bands)).reshape(n_pad, 1)
    scale = jnp.pad(1.0 / (4.0 * std), (0, n_pad - n_bands),
                    constant_values=1.0).reshape(n_pad, 1)

    img_flat = images.reshape(b, n_bands, hw_in)
    img_pad = jnp.pad(img_flat, ((0, 0), (0, n_pad - n_bands), (0, 0)))

    # 4 flip-variant resize matrices, baked as a compile-time bf16 constant.
    kron4 = jnp.asarray(_kron_resize_variants(size, size, h_in, w_in),
                        dtype=jnp.bfloat16)               # (4, hw_in, hw_out)

    flip_idx = flip_idx.astype(jnp.int32)

    grid_spec = pltpu.PrefetchScalarGridSpec(
        num_scalar_prefetch=1,                 # flip_idx -> SMEM, feeds index_maps
        grid=(b,),
        in_specs=[
            pl.BlockSpec((n_pad, 1), lambda i, flip: (0, 0)),                     # low
            pl.BlockSpec((n_pad, 1), lambda i, flip: (0, 0)),                     # scale
            pl.BlockSpec((None, n_pad, hw_in), lambda i, flip: (i, 0, 0)),        # image
            pl.BlockSpec((None, hw_in, hw_out), lambda i, flip: (flip[i], 0, 0)),  # kron
        ],
        out_specs=pl.BlockSpec((None, n_pad, hw_out), lambda i, flip: (i, 0, 0)),
    )

    out_pad = pl.pallas_call(
        _norm_resize_kernel,
        out_shape=jax.ShapeDtypeStruct((b, n_pad, hw_out), jnp.float32),
        grid_spec=grid_spec,
        compiler_params=pltpu.CompilerParams(
            dimension_semantics=("parallel",)),
    )(flip_idx, low, scale, img_pad, kron4)

    return out_pad[:, :n_bands, :].reshape(b, n_bands, size, size)


# ---------------------------------------------------------------------------
# Public wrappers mirroring the torch module.
# ---------------------------------------------------------------------------
@functools.partial(jax.jit, static_argnames=("size", "split"))
def cls_data_augmentation_softcon(images, mean, std, rng_key, *, size, split):
    """images: (B, 13, H, W) or (13, H, W). Returns float32 with spatial = size."""
    single = images.ndim == 3
    if single:
        images = images[None]
    batch = images.shape[0]

    if split == "train":
        # Per-sample RandomHorizontalFlip / RandomVerticalFlip flags (p=0.5),
        # folded into the kron-variant selection inside the kernel.
        kh, kv = jax.random.split(rng_key)
        hflip = jax.random.bernoulli(kh, 0.5, (batch,))
        vflip = jax.random.bernoulli(kv, 0.5, (batch,))
        flip_idx = hflip.astype(jnp.int32) + 2 * vflip.astype(jnp.int32)
    else:
        flip_idx = jnp.zeros((batch,), jnp.int32)

    out = _augment_batched(images, mean, std, flip_idx, size=size)
    return out[0] if single else out


def forward(sample, mean, std, rng_key, *, size, split):
    """Mirrors ClsDataAugmentationSoftCon.forward: returns (x_out, label, meta)."""
    x_out = cls_data_augmentation_softcon(
        sample["image"], mean, std, rng_key, size=size, split=split)
    return x_out, sample["label"], sample["meta"]


# ---------------------------------------------------------------------------
# Self-test
# ---------------------------------------------------------------------------
if __name__ == "__main__":
    key = jax.random.PRNGKey(0)
    k_img, k_mean, k_std, k_aug = jax.random.split(key, 4)

    B, n_bands, h_in, w_in = 8, 13, 16, 16   # 13 Sentinel-2 bands, small spatial
    size = 32                                # Resize target

    images = jax.random.normal(k_img, (B, n_bands, h_in, w_in), jnp.float32) * 3.0 + 1.0
    mean = jax.random.normal(k_mean, (n_bands,), jnp.float32)
    std = jax.random.uniform(k_std, (n_bands,), jnp.float32, minval=0.5, maxval=2.0)

    # ---- eval path (Resize only) ----
    x_eval = cls_data_augmentation_softcon(images, mean, std, k_aug,
                                           size=size, split="val")
    jax.block_until_ready(x_eval)
    assert x_eval.shape == (B, n_bands, size, size), x_eval.shape

    # ---- train path (Resize + per-sample random H/V flips) ----
    x_train = cls_data_augmentation_softcon(images, mean, std, k_aug,
                                            size=size, split="train")
    jax.block_until_ready(x_train)
    assert x_train.shape == (B, n_bands, size, size), x_train.shape

    # ---- single-sample forward() mirroring the torch module ----
    sample = {"image": images[0], "label": jnp.int32(3), "meta": {"id": 0}}
    x_single, label, meta = forward(sample, mean, std, k_aug, size=size, split="val")
    jax.block_until_ready(x_single)
    assert x_single.shape == (n_bands, size, size), x_single.shape

    # ---- reference: pure-JAX separable bilinear resize of normalized images ----
    ry = jnp.asarray(_interp_matrix_np(size, h_in))
    rx = jnp.asarray(_interp_matrix_np(size, w_in))
    low_ref = (mean - 2.0 * std)[None, :, None, None]
    norm = jnp.clip((images - low_ref) / (4.0 * std)[None, :, None, None], 0.0, 1.0)
    ref = jnp.einsum("op,bcpq,wq->bcow", ry, norm, rx)

    # bf16 kron/LHS operands (f32 accumulate) -> ~1e-3..1e-2 abs error expected.
    err = float(jnp.max(jnp.abs(ref - x_eval)))
    assert err < 3e-2, err

    # ---- verify the flip folding explicitly (covers all 4 variants) ----
    flip_idx = jnp.arange(B, dtype=jnp.int32) % 4
    x_flip = _augment_batched(images, mean, std, flip_idx, size=size)
    jax.block_until_ready(x_flip)
    hf = (flip_idx % 2).astype(bool)
    vf = (flip_idx // 2).astype(bool)
    exp = jnp.where(hf[:, None, None, None], ref[:, :, :, ::-1], ref)
    exp = jnp.where(vf[:, None, None, None], exp[:, :, ::-1, :], exp)
    err_f = float(jnp.max(jnp.abs(exp - x_flip)))
    assert err_f < 3e-2, err_f

    # sanity: clamped-normalized values interpolated stay (approximately) in [0, 1]
    assert float(jnp.min(x_eval)) >= -1e-3 and float(jnp.max(x_eval)) <= 1.0 + 1e-2

    print("KERNEL_OK")
</pallas_src>

<mosaic_0001>
module attributes {stable_mosaic.version = 11 : i64} {
  func.func @_norm_resize_kernel(%arg0: i32, %arg1: memref<8xi32, #tpu.memory_space<smem>>, %arg2: memref<16x1xf32, #tpu.memory_space<vmem>>, %arg3: memref<16x1xf32, #tpu.memory_space<vmem>>, %arg4: memref<1x16x256xf32, #tpu.memory_space<vmem>>, %arg5: memref<1x256x1024xbf16, #tpu.memory_space<vmem>>, %arg6: memref<1x16x1024xf32, #tpu.memory_space<vmem>>) attributes {dimension_semantics = [#tpu.dimension_semantics<parallel>], iteration_bounds = array<i64: 8>, scalar_prefetch = 1 : i64, scratch_operands = 0 : i64, tpu.core_type = #tpu.core_type<tc>, window_params = [{pipeline_mode = #tpu.pipeline_mode<synchronous>, transform_indices = @transform_0, window_bounds = array<i64: 16, 1>}, {pipeline_mode = #tpu.pipeline_mode<synchronous>, transform_indices = @transform_1, window_bounds = array<i64: 16, 1>}, {transform_indices = @transform_2, window_bounds = array<i64: 1, 16, 256>}, {transform_indices = @transform_3, window_bounds = array<i64: 1, 256, 1024>}, {transform_indices = @transform_4, window_bounds = array<i64: 1, 16, 1024>}]} {
    %c0 = arith.constant 0 : index
    %c0_0 = arith.constant 0 : index
    %c0_1 = arith.constant 0 : index
    %0 = vector.load %arg4[%c0, %c0_0, %c0_1] : memref<1x16x256xf32, #tpu.memory_space<vmem>>, vector<1x16x256xf32>
    %1 = vector.shape_cast %0 : vector<1x16x256xf32> to vector<16x256xf32>
    %c0_2 = arith.constant 0 : index
    %c0_3 = arith.constant 0 : index
    %2 = vector.load %arg2[%c0_2, %c0_3] : memref<16x1xf32, #tpu.memory_space<vmem>>, vector<16x1xf32>
    %3 = vector.broadcast %2 : vector<16x1xf32> to vector<16x256xf32>
    %4 = arith.subf %1, %3 : vector<16x256xf32>
    %c0_4 = arith.constant 0 : index
    %c0_5 = arith.constant 0 : index
    %5 = vector.load %arg3[%c0_4, %c0_5] : memref<16x1xf32, #tpu.memory_space<vmem>>, vector<16x1xf32>
    %6 = vector.broadcast %5 : vector<16x1xf32> to vector<16x256xf32>
    %7 = arith.mulf %4, %6 : vector<16x256xf32>
    %cst = arith.constant 0.000000e+00 : f32
    %cst_6 = arith.constant 1.000000e+00 : f32
    %8 = vector.broadcast %cst : f32 to vector<16x256xf32>
    %9 = arith.maximumf %8, %7 : vector<16x256xf32>
    %10 = vector.broadcast %cst_6 : f32 to vector<16x256xf32>
    %11 = arith.minimumf %10, %9 : vector<16x256xf32>
    %12 = arith.truncf %11 : vector<16x256xf32> to vector<16x256xbf16>
    %c0_7 = arith.constant 0 : index
    %c0_8 = arith.constant 0 : index
    %c0_9 = arith.constant 0 : index
    %13 = vector.load %arg5[%c0_7, %c0_8, %c0_9] : memref<1x256x1024xbf16, #tpu.memory_space<vmem>>, vector<1x256x1024xbf16>
    %14 = vector.shape_cast %13 : vector<1x256x1024xbf16> to vector<256x1024xbf16>
    %cst_10 = arith.constant dense<0.000000e+00> : vector<16x1024xf32>
    %15 = tpu.matmul %12, %14, %cst_10 {dimension_numbers = #tpu.dot_dimension_numbers<[1], [0], [0], [1], [0, 0, 1, 1], [], []>} : vector<16x256xbf16>, vector<256x1024xbf16>, vector<16x1024xf32> -> vector<16x1024xf32>
    %c0_11 = arith.constant 0 : index
    %c0_12 = arith.constant 0 : index
    %c0_13 = arith.constant 0 : index
    %16 = vector.load %arg6[%c0_11, %c0_12, %c0_13] : memref<1x16x1024xf32, #tpu.memory_space<vmem>>, vector<1x16x1024xf32>
    %17 = vector.shape_cast %16 : vector<1x16x1024xf32> to vector<16x1024xf32>
    %18 = vector.shape_cast %15 : vector<16x1024xf32> to vector<1x16x1024xf32>
    tpu.vector_store %arg6[%c0_11, %c0_12, %c0_13], %18 {strides = array<i32>} : memref<1x16x1024xf32, #tpu.memory_space<vmem>>, vector<1x16x1024xf32>,
    return
  }
  func.func @transform_0(%arg0: i32, %arg1: memref<8xi32, #tpu.memory_space<smem>>) -> (i32, i32) {
    %c0_i32 = arith.constant 0 : i32
    %c0_i32_0 = arith.constant 0 : i32
    %c0_i32_1 = arith.constant 0 : i32
    return %c0_i32, %c0_i32_0 : i32, i32
  }
  func.func @transform_1(%arg0: i32, %arg1: memref<8xi32, #tpu.memory_space<smem>>) -> (i32, i32) {
    %c0_i32 = arith.constant 0 : i32
    %c0_i32_0 = arith.constant 0 : i32
    %c0_i32_1 = arith.constant 0 : i32
    return %c0_i32, %c0_i32_0 : i32, i32
  }
  func.func @transform_2(%arg0: i32, %arg1: memref<8xi32, #tpu.memory_space<smem>>) -> (i32, i32, i32) {
    %c0_i32 = arith.constant 0 : i32
    %c0_i32_0 = arith.constant 0 : i32
    %c0_i32_1 = arith.constant 0 : i32
    return %arg0, %c0_i32, %c0_i32_0 : i32, i32, i32
  }
  func.func @transform_3(%arg0: i32, %arg1: memref<8xi32, #tpu.memory_space<smem>>) -> (i32, i32, i32) {
    %0 = arith.index_cast %arg0 : i32 to index
    %1 = memref.load %arg1[%0] : memref<8xi32, #tpu.memory_space<smem>>
    %c0_i32 = arith.constant 0 : i32
    %c0_i32_0 = arith.constant 0 : i32
    %c0_i32_1 = arith.constant 0 : i32
    return %1, %c0_i32, %c0_i32_0 : i32, i32, i32
  }
  func.func @transform_4(%arg0: i32, %arg1: memref<8xi32, #tpu.memory_space<smem>>) -> (i32, i32, i32) {
    %c0_i32 = arith.constant 0 : i32
    %c0_i32_0 = arith.constant 0 : i32
    %c0_i32_1 = arith.constant 0 : i32
    return %arg0, %c0_i32, %c0_i32_0 : i32, i32, i32
  }
}

</mosaic_0001>

<bundles_post_ra>
// kernel: _augment_batched.1
= control target key start
LH: loop header
LB: loop body
LE: loop exit
PB: predicated region body
PF: predicated region fallthrough
CT: control target
= control target key end

     0   :  { %s2172_s21 = smov [#allocation3]   ;;  %s2617_s0 = inlined_call_operand.hbm [shape: s32[8], index: 0, kind: input, shape index: {}]   ;;  %s2618_s1 = inlined_call_operand.vmem [shape: f32[16,1], index: 1, kind: input, shape index: {}]   ;;  %s2619_s2 = inlined_call_operand.vmem [shape: f32[16,1], index: 2, kind: input, shape index: {}]   ;;  %s2620_s3 = inlined_call_operand.vmem [shape: f32[8,16,256], index: 3, kind: input, shape index: {}]   ;;  %s2621_s4 = inlined_call_operand.hbm [shape: bf16[4,256,1024], index: 4, kind: input, shape index: {}]   ;;  %s2622_s5 = inlined_call_operand.vmem [shape: f32[8,16,1024], index: 5, kind: output, shape index: {}]  }
   0x1   :  { %s11_s20 = sshll.u32 %s2617_s0, 4  ;;  %s12_s20 = int_to_ptr.hbm [resolvable:$true] %s11_s20 }
   0x2   :  { %14 = dma.hbm_to_smem %s12_s20, 16, %s2172_s21, [#allocation2] }
   0x3   :  { %2150 = dma.done.wait [#allocation2], 16 }
   0x4   :  { %2151 = vsyncadd [#allocation2], 4294967280 }
   0x5   :  { %17 = sfence }
   0x6   :  { %18 = vsyncpa [#allocation5], 0 }
   0x7   :  { %20 = vsyncpa [#allocation5 + $0x1], 0  ;;  %s2209_s22 = smov 0   ;;  %s2211_s23 = smov 0  }
   0x8   :  { %s2213_s24 = smov 0   ;;  %s2215_s25 = smov 0  }
   0x9 LB: > { %s2225_s0 = sadd.s32 1, %s2170_s25   ;;  %s2227_s26 = sadd.s32 4294967295, %s2170_s25   ;;  %s2170_s25 = sphi %s2215_s25, %s2630_s25   ;;  %s2166_s24 = sphi %s2213_s24, %s2629_s24   ;;  %s2162_s23 = sphi %s2211_s23, %s2628_s23   ;;  %s2158_s22 = sphi %s2209_s22, %s2627_s22  }
   0xa   : > { %s98_s27 = sld [smem:[#allocation3 + %s2170_s25]]  ;;  %p110_p0 = scmp.ne.s32.totalorder %s2166_s24, %s2162_s23 }
   0xb   : > { %s99_s28 = sld [smem:[#allocation3 + %s2225_s0]]  ;;  %p111_p1 = scmp.eq.s32.totalorder %s2170_s25, 0 }
   0xc   : > { %p116_p2 = scmp.ne.s32.totalorder %s2162_s23, %s2158_s22  ;;  %p117_p3 = scmp.eq.s32.totalorder %s2227_s26, 0 }
   0xd   : > { %p2234_p4 = por %p111_p1, %p110_p0  ;;  %s180_s6 = sand.u32 1, %s2166_s24  }
   0xe   : > { %p2238_p5 = por %p117_p3, %p116_p2  ;;  %s103_s7 = sadd.s32 1, %s2166_s24 }
   0xf   : > { %s1389_s8 = sshll.u32 %s180_s6, 10  ;;  %p2053_p6 = scmp.lt.s32.totalorder %s2170_s25, 8 }
  0x10   : > { %s2043_s10 = scalar_select %p2234_p4, [#allocation3], [#allocation6] }
  0x11   : > { %s100_s9 = ssub.s32 %s98_s27, %s99_s28  ;;  %p2253_p8 = pnand %p2053_p6, %p2234_p4 }
  0x12   : > { %p101_p7 = scmp.eq.s32.totalorder %s100_s9, 0  ;;  %s2632_s10 = smov (!%p2053_p6, %s2043_s10), [#allocation7] }
  0x13   : > { %s2044_s12 = scalar_select %p2234_p4, %s2170_s25, 0 }
  0x14   : > { %s2247_s11 = scalar_select %p101_p7, %s2166_s24, %s103_s7  }
  0x15   : > { %s2634_s12 = smov (!%p2053_p6, %s2044_s12), 0  ;;  %s184_s15 = scalar_lea.vmem [#allocation4], %s1389_s8 }
  0x16   : > { %s185_s14 = sld [smem:[%s2632_s10 + %s2634_s12]]  ;;  %s2257_s16 = sshll.u32 %s184_s15, 4  ;;  %s194_s16 = int_to_ptr.vmem [resolvable:$true] %s2257_s16 }
  0x17   : > { %p1392_p9 = scmp.ge.s32.totalorder %s2170_s25, 1  ;;  %p201_p10 = scmp.lt.s32.totalorder %s2170_s25, 9 }
  0x18   : > { %s181_s27 = scalar_lea.sflag [#allocation5], %s180_s6  ;;  %p2108_p13 = pneg %p2253_p8 }
  0x19   : > { %p2259_p11 = pnand %p1392_p9, %p201_p10  ;;  %s2111_s8 = scalar_lea.hbm %s2621_s4, 4096 }
  0x1c   : > { %s1912_s18 = sshll.u32 %s185_s14, 10 }
  0x1d   : > { %s190_s21 = scalar_lea.hbm %s2621_s4, %s1912_s18 }
  0x1e   : > { %s191_s22 = sshll.u32 %s190_s21, 4  ;;  %s192_s22 = int_to_ptr.hbm [resolvable:$true] %s191_s22 }
  0x1f   : > { %s2104_s28 = sshra.s32 %s192_s22, 4  ;;  %s2105_s28 = int_to_ptr.hbm [resolvable:$true] %s2104_s28 }
  0x20   : > { %s2106_s29 = scalar_lea.hbm %s2105_s28, 1024  ;;  %p2112_p2 = scmp.lt.s32.totalorder %s2105_s28, %s2621_s4 }
  0x21   : > { %p2107_p12 = scmp.ne.s32.totalorder %s2105_s28, %s2106_s29  ;;  %p2113_p3 = scmp.lt.s32.totalorder %s2111_s8, %s2106_s29 }
  0x23   : > { %p2109_p0 = pnand %p2108_p13, %p2107_p12  ;;  %p2114_p4 = por %p2113_p3, %p2112_p2 }
  0x25   : > { %p2110_p1 = pneg %p2109_p0 }
  0x27   : > { %p2115_p6 = pnand %p2114_p4, %p2110_p1 }
  0x29   : > { %2118 = shalt.err (!%p2115_p6)
}
  0x2a   : > { %s2173_s6 = smov 512   ;;  %s2174_s12 = smov 32  }
  0x2b   : > { %2052 = dma.hbm_to_vmem [thread:$0]  (!%p2253_p8), %s192_s22, 16384, %s194_s16, %s181_s27, %s2173_s6, %s2173_s6, %s2174_s12  }
  0x2c   : > { %205 = sbr.rel (%p2259_p11) target bundleno = 395 (0x18b), region = 36  ;;  %s207_s14 = sand.u32 (!%p2259_p11), 1, %s2162_s23  }
  0x2d   : > { %s1393_s15 = sshll.u32 (!%p2259_p11), %s207_s14, 10  ;;  %s208_s18 = scalar_lea.sflag (!%p2259_p11), [#allocation5], %s207_s14 }
  0x2e   : > { %s2280_s19 = scalar_lea.vmem (!%p2259_p11), [#allocation4], %s1393_s15 }
  0x31   : > { %2153 = dma.done.wait (%p2238_p5), %s208_s18, 16384  }
  0x32   : > { %2155 = vsyncadd (%p2238_p5), %s208_s18, 4294950912  ;;  %v2175_v0 = vmov 0   ;;  %v273_v1 = vld [vmem:[%s2619_s2] sm:$0xff]  ;;  %v274_v13 = vld [vmem:[%s2619_s2 + $0x8] sm:$0xff]  ;;  %p242_p5 = scmp.lt.s32.totalorder %s2227_s26, 7 }
  0x33   : > { %2091 = vset.pattern.permute.xlu1 %v2175_v0  ;;  %2090 = vset.pattern.permute.xlu0 %v2175_v0  ;;  %v257_v2 = vld [vmem:[%s2618_s1] sm:$0xff]  ;;  %v258_v14 = vld [vmem:[%s2618_s1 + $0x8] sm:$0xff] }
  0x34   : > { %277 = vperm.xlu1 %2091, %v273_v1   ;;  %261 = vperm.xlu0 %2090, %v257_v2   ;;  %v1624_v3 = vld [vmem:[%s2280_s19 + $0x1c0] sm:$0xf]  ;;  %v1971_v8 = vld [vmem:[%s2280_s19 + $0x1c4] sm:$0xf]  ;;  %s2636_s26 = smov (!%p242_p5, %s2227_s26), 7 }
  0x35   : > { %v1975_v4 = vld [vmem:[%s2280_s19 + $0x1dc] sm:$0xf0]  ;;  %v1626_v10 = vld [vmem:[%s2280_s19 + $0x1e0] sm:$0xf0]  ;;  %s1913_s28 = sshll.u32 %s2636_s26, 5  ;;  %s1914_s8 = sshll.u32 %s2636_s26, 7 }
  0x36   : > { %v1625_v5 = vor.u32 %v1975_v4, %v1624_v3  ;;  %v1880_v6 = vld [vmem:[%s2280_s19 + $0x3c0] sm:$0xf]  ;;  %v2035_v11 = vld [vmem:[%s2280_s19 + $0x3c4] sm:$0xf]  ;;  %v1629_v15 = vor.u32 %v1971_v8, %v1626_v10  ;;  %s246_s7 = scalar_lea.vmem %s2620_s3, %s1913_s28  ;;  %s2586_s6 = scalar_lea.vmem %s2622_s5, %s1914_s8 }
  0x37   : > { %v2039_v7 = vld [vmem:[%s2280_s19 + $0x3dc] sm:$0xf0]  ;;  %v1882_v12 = vld [vmem:[%s2280_s19 + $0x3e0] sm:$0xf0] }
  0x38   : > { %v1881_v9 = vor.u32 %v2039_v7, %v1880_v6  ;;  %1067 = vmatpush.bf16.msra.mxu0 %v1625_v5  ;;  %v1885_v16 = vor.u32 %v2035_v11, %v1882_v12  ;;  %v1592_v17 = vld [vmem:[%s2280_s19 + $0x180] sm:$0xf]  ;;  %v1963_v22 = vld [vmem:[%s2280_s19 + $0x184] sm:$0xf]  ;;  %1095 = vmatpush.bf16.msra.mxu2 %v1629_v15 }
  0x39   : > { %v1967_v18 = vld [vmem:[%s2280_s19 + $0x19c] sm:$0xf0]  ;;  %v1594_v23 = vld [vmem:[%s2280_s19 + $0x1a0] sm:$0xf0] }
  0x3a   : > { %v1848_v19 = vld [vmem:[%s2280_s19 + $0x380] sm:$0xf]  ;;  %1081 = vmatpush.bf16.msra.mxu1 %v1881_v9  ;;  %v1593_v20 = vor.u32 %v1967_v18, %v1592_v17  ;;  %1109 = vmatpush.bf16.msra.mxu3 %v1885_v16  ;;  %v1597_v25 = vor.u32 %v1963_v22, %v1594_v23  ;;  %v2027_v26 = vld [vmem:[%s2280_s19 + $0x384] sm:$0xf] }
  0x3b   : > { %v2031_v21 = vld [vmem:[%s2280_s19 + $0x39c] sm:$0xf0]  ;;  %v1850_v27 = vld [vmem:[%s2280_s19 + $0x3a0] sm:$0xf0] }
  0x3c   : > { %v1849_v24 = vor.u32 %v2031_v21, %v1848_v19  ;;  %v1560_v28 = vld [vmem:[%s2280_s19 + $0x140] sm:$0xf]  ;;  %v1853_v29 = vor.u32 %v2027_v26, %v1850_v27  ;;  %1068 = vmatpush.bf16.msra.mxu0 %v1593_v20  ;;  %v1955_v34 = vld [vmem:[%s2280_s19 + $0x144] sm:$0xf]  ;;  %282 = vperm.xlu1 %2091, %v274_v13  }
  0x3d   : > { %v1959_v30 = vld [vmem:[%s2280_s19 + $0x15c] sm:$0xf0]  ;;  %v1562_v35 = vld [vmem:[%s2280_s19 + $0x160] sm:$0xf0]  ;;  %266 = vperm.xlu0 %2090, %v258_v14   ;;  %1096 = vmatpush.bf16.msra.mxu2 %v1597_v25 }
  0x3e   : > { %v1816_v31 = vld [vmem:[%s2280_s19 + $0x340] sm:$0xf]  ;;  %v1561_v33 = vor.u32 %v1959_v30, %v1560_v28  ;;  %v2019_v36 = vld [vmem:[%s2280_s19 + $0x344] sm:$0xf]  ;;  %1082 = vmatpush.bf16.msra.mxu1 %v1849_v24  ;;  %v1565_v41 = vor.u32 %v1955_v34, %v1562_v35  ;;  %1110 = vmatpush.bf16.msra.mxu3 %v1853_v29  ;;  %v1632_v29 = vld [vmem:[%s2280_s19 + $0x1c8] sm:$0xf] }
  0x3f   : > { %v2023_v32 = vld [vmem:[%s2280_s19 + $0x35c] sm:$0xf0]  ;;  %v1818_v37 = vld [vmem:[%s2280_s19 + $0x360] sm:$0xf0]  ;;  %v1976_v30 = vld [vmem:[%s2280_s19 + $0x1e4] sm:$0xf0] }
  0x40   : > { %v1528_v38 = vld [vmem:[%s2280_s19 + $0x100] sm:$0xf]  ;;  %v1817_v40 = vor.u32 %v2023_v32, %v1816_v31  ;;  %v1821_v43 = vor.u32 %v2019_v36, %v1818_v37  ;;  %v1947_v45 = vld [vmem:[%s2280_s19 + $0x104] sm:$0xf]  ;;  %1069 = vmatpush.bf16.msra.mxu0 %v1561_v33  ;;  %v1888_v36 = vld [vmem:[%s2280_s19 + $0x3c8] sm:$0xf] }
  0x41   : > { %v1951_v39 = vld [vmem:[%s2280_s19 + $0x11c] sm:$0xf0]  ;;  %v1530_v46 = vld [vmem:[%s2280_s19 + $0x120] sm:$0xf0]  ;;  %1097 = vmatpush.bf16.msra.mxu2 %v1565_v41  ;;  %v2040_v37 = vld [vmem:[%s2280_s19 + $0x3e4] sm:$0xf0] }
  0x42   : > { %v1784_v42 = vld [vmem:[%s2280_s19 + $0x300] sm:$0xf]  ;;  %v1529_v47 = vor.u32 %v1951_v39, %v1528_v38  ;;  %v2011_v48 = vld [vmem:[%s2280_s19 + $0x304] sm:$0xf]  ;;  %1083 = vmatpush.bf16.msra.mxu1 %v1817_v40  ;;  %v1533_v53 = vor.u32 %v1947_v45, %v1530_v46  ;;  %1111 = vmatpush.bf16.msra.mxu3 %v1821_v43  ;;  %v1972_v38 = vld [vmem:[%s2280_s19 + $0x1cc] sm:$0xf]  ;;  %v1633_v39 = vor.u32 %v1976_v30, %v1632_v29 }
  0x43   : > { %v2015_v44 = vld [vmem:[%s2280_s19 + $0x31c] sm:$0xf0]  ;;  %v1786_v49 = vld [vmem:[%s2280_s19 + $0x320] sm:$0xf0]  ;;  %v1634_v40 = vld [vmem:[%s2280_s19 + $0x1e8] sm:$0xf0] }
  0x44   : > { %v1496_v50 = vld [vmem:[%s2280_s19 + $0xc0] sm:$0xf]  ;;  %v1785_v52 = vor.u32 %v2015_v44, %v1784_v42  ;;  %v1789_v55 = vor.u32 %v2011_v48, %v1786_v49  ;;  %v1939_v57 = vld [vmem:[%s2280_s19 + $0xc4] sm:$0xf]  ;;  %1070 = vmatpush.bf16.msra.mxu0 %v1529_v47  ;;  %v2036_v41 = vld [vmem:[%s2280_s19 + $0x3cc] sm:$0xf]  ;;  %v1889_v48 = vor.u32 %v2040_v37, %v1888_v36  ;;  %v1637_v49 = vor.u32 %v1972_v38, %v1634_v40 }
  0x45   : > { %v1943_v51 = vld [vmem:[%s2280_s19 + $0xdc] sm:$0xf0]  ;;  %v1498_v58 = vld [vmem:[%s2280_s19 + $0xe0] sm:$0xf0]  ;;  %1098 = vmatpush.bf16.msra.mxu2 %v1533_v53  ;;  %v1890_v42 = vld [vmem:[%s2280_s19 + $0x3e8] sm:$0xf0] }
  0x46   : > { %v1752_v54 = vld [vmem:[%s2280_s19 + $0x2c0] sm:$0xf]  ;;  %v1497_v59 = vor.u32 %v1943_v51, %v1496_v50  ;;  %v2003_v60 = vld [vmem:[%s2280_s19 + $0x2c4] sm:$0xf]  ;;  %1084 = vmatpush.bf16.msra.mxu1 %v1785_v52  ;;  %v1501_v1 = vor.u32 %v1939_v57, %v1498_v58  ;;  %1112 = vmatpush.bf16.msra.mxu3 %v1789_v55  ;;  %v1600_v45 = vld [vmem:[%s2280_s19 + $0x188] sm:$0xf]  ;;  %v1893_v50 = vor.u32 %v2036_v41, %v1890_v42 }
  0x47   : > { %v2007_v56 = vld [vmem:[%s2280_s19 + $0x2dc] sm:$0xf0]  ;;  %v1754_v61 = vld [vmem:[%s2280_s19 + $0x2e0] sm:$0xf0]  ;;  %v1968_v46 = vld [vmem:[%s2280_s19 + $0x1a4] sm:$0xf0] }
  0x48   : > { %v1464_v62 = vld [vmem:[%s2280_s19 + $0x80] sm:$0xf]  ;;  %v1753_v0 = vor.u32 %v2007_v56, %v1752_v54  ;;  %v1757_v3 = vor.u32 %v2003_v60, %v1754_v61  ;;  %v1931_v5 = vld [vmem:[%s2280_s19 + $0x84] sm:$0xf]  ;;  %1071 = vmatpush.bf16.msra.mxu0 %v1497_v59  ;;  %v1856_v51 = vld [vmem:[%s2280_s19 + $0x388] sm:$0xf]  ;;  %v1601_v54 = vor.u32 %v1968_v46, %v1600_v45 }
  0x49   : > { %v1935_v63 = vld [vmem:[%s2280_s19 + $0x9c] sm:$0xf0]  ;;  %v1466_v6 = vld [vmem:[%s2280_s19 + $0xa0] sm:$0xf0]  ;;  %1099 = vmatpush.bf16.msra.mxu2 %v1501_v1  ;;  %v2032_v52 = vld [vmem:[%s2280_s19 + $0x3a4] sm:$0xf0] }
  0x4a   : > { %v1720_v2 = vld [vmem:[%s2280_s19 + $0x280] sm:$0xf]  ;;  %v1465_v7 = vor.u32 %v1935_v63, %v1464_v62  ;;  %v1995_v8 = vld [vmem:[%s2280_s19 + $0x284] sm:$0xf]  ;;  %1085 = vmatpush.bf16.msra.mxu1 %v1753_v0  ;;  %v1469_v13 = vor.u32 %v1931_v5, %v1466_v6  ;;  %1113 = vmatpush.bf16.msra.mxu3 %v1757_v3  ;;  %v1964_v53 = vld [vmem:[%s2280_s19 + $0x18c] sm:$0xf]  ;;  %v1857_v60 = vor.u32 %v2032_v52, %v1856_v51 }
  0x4b   : > { %v1999_v4 = vld [vmem:[%s2280_s19 + $0x29c] sm:$0xf0]  ;;  %v1722_v9 = vld [vmem:[%s2280_s19 + $0x2a0] sm:$0xf0]  ;;  %v1602_v55 = vld [vmem:[%s2280_s19 + $0x1a8] sm:$0xf0] }
  0x4c   : > { %v1432_v10 = vld [vmem:[%s2280_s19 + $0x40] sm:$0xf]  ;;  %v1721_v12 = vor.u32 %v1999_v4, %v1720_v2  ;;  %v1725_v15 = vor.u32 %v1995_v8, %v1722_v9  ;;  %v1923_v17 = vld [vmem:[%s2280_s19 + $0x44] sm:$0xf]  ;;  %1072 = vmatpush.bf16.msra.mxu0 %v1465_v7  ;;  %v2028_v56 = vld [vmem:[%s2280_s19 + $0x38c] sm:$0xf]  ;;  %v1605_v61 = vor.u32 %v1964_v53, %v1602_v55 }
  0x4d   : > { %v1927_v11 = vld [vmem:[%s2280_s19 + $0x5c] sm:$0xf0]  ;;  %v1434_v18 = vld [vmem:[%s2280_s19 + $0x60] sm:$0xf0]  ;;  %1100 = vmatpush.bf16.msra.mxu2 %v1469_v13  ;;  %v1858_v57 = vld [vmem:[%s2280_s19 + $0x3a8] sm:$0xf0] }
  0x4e   : > { %v1688_v14 = vld [vmem:[%s2280_s19 + $0x240] sm:$0xf]  ;;  %v1433_v19 = vor.u32 %v1927_v11, %v1432_v10  ;;  %v1987_v20 = vld [vmem:[%s2280_s19 + $0x244] sm:$0xf]  ;;  %1086 = vmatpush.bf16.msra.mxu1 %v1721_v12  ;;  %v1437_v27 = vor.u32 %v1923_v17, %v1434_v18  ;;  %1114 = vmatpush.bf16.msra.mxu3 %v1725_v15  ;;  %v1568_v58 = vld [vmem:[%s2280_s19 + $0x148] sm:$0xf]  ;;  %v1861_v62 = vor.u32 %v2028_v56, %v1858_v57 }
  0x4f   : > { %v1991_v16 = vld [vmem:[%s2280_s19 + $0x25c] sm:$0xf0]  ;;  %v1690_v21 = vld [vmem:[%s2280_s19 + $0x260] sm:$0xf0]  ;;  %v1960_v59 = vld [vmem:[%s2280_s19 + $0x164] sm:$0xf0] }
  0x50   : > { %v1400_v22 = vld [vmem:[%s2280_s19] sm:$0xf]  ;;  %v1689_v26 = vor.u32 %v1991_v16, %v1688_v14  ;;  %v1915_v28 = vld [vmem:[%s2280_s19 + $0x4] sm:$0xf]  ;;  %v1693_v31 = vor.u32 %v1987_v20, %v1690_v21  ;;  %1073 = vmatpush.bf16.msra.mxu0 %v1433_v19  ;;  %v1824_v63 = vld [vmem:[%s2280_s19 + $0x348] sm:$0xf]  ;;  %v1569_v2 = vor.u32 %v1960_v59, %v1568_v58 }
  0x51   : > { %v1919_v23 = vld [vmem:[%s2280_s19 + $0x1c] sm:$0xf0]  ;;  %v1402_v32 = vld [vmem:[%s2280_s19 + $0x20] sm:$0xf0]  ;;  %1101 = vmatpush.bf16.msra.mxu2 %v1437_v27  ;;  %v2024_v0 = vld [vmem:[%s2280_s19 + $0x364] sm:$0xf0] }
  0x52   : > { %v1656_v24 = vld [vmem:[%s2280_s19 + $0x200] sm:$0xf]  ;;  %v1979_v33 = vld [vmem:[%s2280_s19 + $0x204] sm:$0xf]  ;;  %v1401_v35 = vor.u32 %v1919_v23, %v1400_v22  ;;  %1087 = vmatpush.bf16.msra.mxu1 %v1689_v26  ;;  %v1405_v44 = vor.u32 %v1915_v28, %v1402_v32  ;;  %1115 = vmatpush.bf16.msra.mxu3 %v1693_v31  ;;  %v1956_v1 = vld [vmem:[%s2280_s19 + $0x14c] sm:$0xf]  ;;  %v1825_v6 = vor.u32 %v2024_v0, %v1824_v63 }
  0x53   : > { %v1983_v25 = vld [vmem:[%s2280_s19 + $0x21c] sm:$0xf0]  ;;  %v1658_v34 = vld [vmem:[%s2280_s19 + $0x220] sm:$0xf0]  ;;  %v1570_v3 = vld [vmem:[%s2280_s19 + $0x168] sm:$0xf0] }
  0x54   : > { %v1657_v43 = vor.u32 %v1983_v25, %v1656_v24  ;;  %v1661_v47 = vor.u32 %v1979_v33, %v1658_v34  ;;  %1074 = vmatpush.bf16.msra.mxu0 %v1401_v35  ;;  %v2020_v4 = vld [vmem:[%s2280_s19 + $0x34c] sm:$0xf]  ;;  %v1573_v7 = vor.u32 %v1956_v1, %v1570_v3  ;;  %v1536_v9 = vld [vmem:[%s2280_s19 + $0x108] sm:$0xf] }
  0x55   : > { %1102 = vmatpush.bf16.msra.mxu2 %v1405_v44  ;;  %v1826_v5 = vld [vmem:[%s2280_s19 + $0x368] sm:$0xf0]  ;;  %v1952_v10 = vld [vmem:[%s2280_s19 + $0x124] sm:$0xf0] }
  0x56   : > { %1088 = vmatpush.bf16.msra.mxu1 %v1657_v43  ;;  %1116 = vmatpush.bf16.msra.mxu3 %v1661_v47  ;;  %v1829_v8 = vor.u32 %v2020_v4, %v1826_v5  ;;  %v1792_v11 = vld [vmem:[%s2280_s19 + $0x308] sm:$0xf]  ;;  %v1537_v12 = vor.u32 %v1952_v10, %v1536_v9  ;;  %v1948_v15 = vld [vmem:[%s2280_s19 + $0x10c] sm:$0xf] }
  0x57   : > { %v2016_v13 = vld [vmem:[%s2280_s19 + $0x324] sm:$0xf0]  ;;  %v1538_v16 = vld [vmem:[%s2280_s19 + $0x128] sm:$0xf0] }
  0x58   : > { %1123 = vmatpush.bf16.msrb.mxu0 %v1633_v39  ;;  %v1793_v14 = vor.u32 %v2016_v13, %v1792_v11  ;;  %v2012_v17 = vld [vmem:[%s2280_s19 + $0x30c] sm:$0xf]  ;;  %v1541_v18 = vor.u32 %v1948_v15, %v1538_v16  ;;  %v1504_v21 = vld [vmem:[%s2280_s19 + $0xc8] sm:$0xf]  ;;  %v255_v11 = vld [vmem:[%s246_s7 + $0x10] sm:$0xff] }
  0x59   : > { %1151 = vmatpush.bf16.msrb.mxu2 %v1637_v49  ;;  %v1794_v19 = vld [vmem:[%s2280_s19 + $0x328] sm:$0xf0]  ;;  %v1944_v22 = vld [vmem:[%s2280_s19 + $0xe4] sm:$0xf0] }
  0x5a   : > { %1137 = vmatpush.bf16.msrb.mxu1 %v1889_v48  ;;  %1165 = vmatpush.bf16.msrb.mxu3 %v1893_v50  ;;  %v1797_v20 = vor.u32 %v2012_v17, %v1794_v19  ;;  %v1760_v23 = vld [vmem:[%s2280_s19 + $0x2c8] sm:$0xf]  ;;  %v1505_v24 = vor.u32 %v1944_v22, %v1504_v21  ;;  %v1940_v26 = vld [vmem:[%s2280_s19 + $0xcc] sm:$0xf] }
  0x5b   : > { %v2008_v25 = vld [vmem:[%s2280_s19 + $0x2e4] sm:$0xf0]  ;;  %v1506_v27 = vld [vmem:[%s2280_s19 + $0xe8] sm:$0xf0] }
  0x5c   : > { %1124 = vmatpush.bf16.msrb.mxu0 %v1601_v54  ;;  %v1761_v28 = vor.u32 %v2008_v25, %v1760_v23  ;;  %v1509_v29 = vor.u32 %v1940_v26, %v1506_v27  ;;  %v2004_v30 = vld [vmem:[%s2280_s19 + $0x2cc] sm:$0xf]  ;;  %v1472_v33 = vld [vmem:[%s2280_s19 + $0x88] sm:$0xf]  ;;  %v1640_v23 = vld [vmem:[%s2280_s19 + $0x1d0] sm:$0xf] }
  0x5d   : > { %1152 = vmatpush.bf16.msrb.mxu2 %v1605_v61  ;;  %v1762_v31 = vld [vmem:[%s2280_s19 + $0x2e8] sm:$0xf0]  ;;  %v1936_v34 = vld [vmem:[%s2280_s19 + $0xa4] sm:$0xf0]  ;;  %v1896_v27 = vld [vmem:[%s2280_s19 + $0x3d0] sm:$0xf] }
  0x5e   : > { %1138 = vmatpush.bf16.msrb.mxu1 %v1857_v60  ;;  %1166 = vmatpush.bf16.msrb.mxu3 %v1861_v62  ;;  %v1765_v32 = vor.u32 %v2004_v30, %v1762_v31  ;;  %v1728_v35 = vld [vmem:[%s2280_s19 + $0x288] sm:$0xf]  ;;  %v1473_v36 = vor.u32 %v1936_v34, %v1472_v33  ;;  %v1932_v39 = vld [vmem:[%s2280_s19 + $0x8c] sm:$0xf]  ;;  %v1642_v30 = vld [vmem:[%s2280_s19 + $0x1f0] sm:$0xf0] }
  0x5f   : > { %v2000_v37 = vld [vmem:[%s2280_s19 + $0x2a4] sm:$0xf0]  ;;  %v1474_v40 = vld [vmem:[%s2280_s19 + $0xa8] sm:$0xf0]  ;;  %v2037_v31 = vld [vmem:[%s2280_s19 + $0x3d4] sm:$0xf] }
  0x60   : > { %1125 = vmatpush.bf16.msrb.mxu0 %v1569_v2  ;;  %v1729_v38 = vor.u32 %v2000_v37, %v1728_v35  ;;  %v1996_v41 = vld [vmem:[%s2280_s19 + $0x28c] sm:$0xf]  ;;  %v1477_v42 = vor.u32 %v1932_v39, %v1474_v40  ;;  %v1440_v45 = vld [vmem:[%s2280_s19 + $0x48] sm:$0xf] }
  0x61   : > { %1153 = vmatpush.bf16.msrb.mxu2 %v1573_v7  ;;  %v1730_v43 = vld [vmem:[%s2280_s19 + $0x2a8] sm:$0xf0]  ;;  %v1928_v46 = vld [vmem:[%s2280_s19 + $0x64] sm:$0xf0]  ;;  %v253_v7 = vld [vmem:[%s246_s7] sm:$0xff] }
  0x62   : > { %1139 = vmatpush.bf16.msrb.mxu1 %v1825_v6  ;;  %1167 = vmatpush.bf16.msrb.mxu3 %v1829_v8  ;;  %v1733_v44 = vor.u32 %v1996_v41, %v1730_v43  ;;  %v1696_v47 = vld [vmem:[%s2280_s19 + $0x248] sm:$0xf]  ;;  %v1441_v48 = vor.u32 %v1928_v46, %v1440_v45  ;;  %v1924_v50 = vld [vmem:[%s2280_s19 + $0x4c] sm:$0xf]  ;;  %v1608_v41 = vld [vmem:[%s2280_s19 + $0x190] sm:$0xf] }
  0x63   : > { %v1992_v49 = vld [vmem:[%s2280_s19 + $0x264] sm:$0xf0]  ;;  %v1442_v51 = vld [vmem:[%s2280_s19 + $0x68] sm:$0xf0]  ;;  %v1864_v45 = vld [vmem:[%s2280_s19 + $0x390] sm:$0xf] }
  0x64   : > { %1126 = vmatpush.bf16.msrb.mxu0 %v1537_v12  ;;  %v1697_v52 = vor.u32 %v1992_v49, %v1696_v47  ;;  %v1445_v53 = vor.u32 %v1924_v50, %v1442_v51  ;;  %v1988_v54 = vld [vmem:[%s2280_s19 + $0x24c] sm:$0xf]  ;;  %v1408_v57 = vld [vmem:[%s2280_s19 + $0x8] sm:$0xf]  ;;  %v256_v12 = vld [vmem:[%s246_s7 + $0x18] sm:$0xff] }
  0x65   : > { %1154 = vmatpush.bf16.msrb.mxu2 %v1541_v18  ;;  %v1698_v55 = vld [vmem:[%s2280_s19 + $0x268] sm:$0xf0]  ;;  %v1920_v58 = vld [vmem:[%s2280_s19 + $0x24] sm:$0xf0]  ;;  %v2033_v46 = vld [vmem:[%s2280_s19 + $0x3ac] sm:$0xf0] }
  0x66   : > { %1140 = vmatpush.bf16.msrb.mxu1 %v1793_v14  ;;  %1168 = vmatpush.bf16.msrb.mxu3 %v1797_v20  ;;  %v1701_v56 = vor.u32 %v1988_v54, %v1698_v55  ;;  %v1664_v59 = vld [vmem:[%s2280_s19 + $0x208] sm:$0xf]  ;;  %v1409_v60 = vor.u32 %v1920_v58, %v1408_v57  ;;  %v1916_v62 = vld [vmem:[%s2280_s19 + $0xc] sm:$0xf]  ;;  %v1965_v47 = vld [vmem:[%s2280_s19 + $0x194] sm:$0xf] }
  0x67   : > { %v1984_v61 = vld [vmem:[%s2280_s19 + $0x224] sm:$0xf0]  ;;  %v1410_v63 = vld [vmem:[%s2280_s19 + $0x28] sm:$0xf0]  ;;  %v2029_v49 = vld [vmem:[%s2280_s19 + $0x394] sm:$0xf] }
  0x68   : > { %1127 = vmatpush.bf16.msrb.mxu0 %v1505_v24  ;;  %v1665_v0 = vor.u32 %v1984_v61, %v1664_v59  ;;  %v1413_v1 = vor.u32 %v1916_v62, %v1410_v63  ;;  %v1980_v2 = vld [vmem:[%s2280_s19 + $0x20c] sm:$0xf]  ;;  %v1977_v24 = vld [vmem:[%s2280_s19 + $0x1ec] sm:$0xf0]  ;;  %v1866_v50 = vld [vmem:[%s2280_s19 + $0x3b0] sm:$0xf0] }
  0x69   : > { %1155 = vmatpush.bf16.msrb.mxu2 %v1509_v29  ;;  %v1666_v3 = vld [vmem:[%s2280_s19 + $0x228] sm:$0xf0]  ;;  %v1973_v29 = vld [vmem:[%s2280_s19 + $0x1d4] sm:$0xf]  ;;  %v1641_v39 = vor.u32 %v1977_v24, %v1640_v23  ;;  %v1961_v54 = vld [vmem:[%s2280_s19 + $0x16c] sm:$0xf0] }
  0x6a   : > { %1141 = vmatpush.bf16.msrb.mxu1 %v1761_v28  ;;  %1169 = vmatpush.bf16.msrb.mxu3 %v1765_v32  ;;  %v1669_v4 = vor.u32 %v1980_v2, %v1666_v3  ;;  %v254_v8 = vld [vmem:[%s246_s7 + $0x8] sm:$0xff]  ;;  %v2041_v28 = vld [vmem:[%s2280_s19 + $0x3ec] sm:$0xf0]  ;;  %v1645_v43 = vor.u32 %v1973_v29, %v1642_v30  ;;  %v1957_v59 = vld [vmem:[%s2280_s19 + $0x154] sm:$0xf] }
  0x6b   : > { %v1897_v40 = vor.u32 %v2041_v28, %v1896_v27  ;;  %v1832_v57 = vld [vmem:[%s2280_s19 + $0x350] sm:$0xf]  ;;  %v2021_v61 = vld [vmem:[%s2280_s19 + $0x354] sm:$0xf] }
  0x6c   : > { %1128 = vmatpush.bf16.msrb.mxu0 %v1473_v36  ;;  %v1898_v36 = vld [vmem:[%s2280_s19 + $0x3f0] sm:$0xf0]  ;;  %v2025_v58 = vld [vmem:[%s2280_s19 + $0x36c] sm:$0xf0] }
  0x6d   : > { %1156 = vmatpush.bf16.msrb.mxu2 %v1477_v42  ;;  %v1969_v42 = vld [vmem:[%s2280_s19 + $0x1ac] sm:$0xf0]  ;;  %v1834_v62 = vld [vmem:[%s2280_s19 + $0x370] sm:$0xf0] }
  0x6e   : > { %1142 = vmatpush.bf16.msrb.mxu1 %v1729_v38  ;;  %1170 = vmatpush.bf16.msrb.mxu3 %v1733_v44  ;;  %v1901_v44 = vor.u32 %v2037_v31, %v1898_v36  ;;  %v1609_v51 = vor.u32 %v1969_v42, %v1608_v41  ;;  %v1953_v2 = vld [vmem:[%s2280_s19 + $0x12c] sm:$0xf0]  ;;  %v1933_v31 = vld [vmem:[%s2280_s19 + $0x94] sm:$0xf] }
  0x6f   : > { %v1736_v29 = vld [vmem:[%s2280_s19 + $0x290] sm:$0xf] }
  0x70   : > { %1129 = vmatpush.bf16.msrb.mxu0 %v1441_v48  ;;  %v1610_v48 = vld [vmem:[%s2280_s19 + $0x1b0] sm:$0xf0]  ;;  %v2001_v30 = vld [vmem:[%s2280_s19 + $0x2ac] sm:$0xf0] }
  0x71   : > { %1157 = vmatpush.bf16.msrb.mxu2 %v1445_v53  ;;  %v1576_v53 = vld [vmem:[%s2280_s19 + $0x150] sm:$0xf]  ;;  %v1613_v55 = vor.u32 %v1965_v47, %v1610_v48  ;;  %v1737_v36 = vor.u32 %v2001_v30, %v1736_v29  ;;  %v1989_v47 = vld [vmem:[%s2280_s19 + $0x254] sm:$0xf]  ;;  %v1958_v29 = vld [vmem:[%s2280_s19 + $0x15c] sm:$0xf] }
  0x72   : > { %1143 = vmatpush.bf16.msrb.mxu1 %v1697_v52  ;;  %1171 = vmatpush.bf16.msrb.mxu3 %v1701_v56  ;;  %v1865_v52 = vor.u32 %v2033_v46, %v1864_v45  ;;  %v1869_v56 = vor.u32 %v2029_v49, %v1866_v50  ;;  %v1577_v63 = vor.u32 %v1961_v54, %v1576_v53  ;;  %v1925_v45 = vld [vmem:[%s2280_s19 + $0x54] sm:$0xf]  ;;  %v1416_v49 = vld [vmem:[%s2280_s19 + $0x10] sm:$0xf]  ;;  %v1586_v30 = vld [vmem:[%s2280_s19 + $0x178] sm:$0xf0] }
  0x73   : > { %v1450_v46 = vld [vmem:[%s2280_s19 + $0x70] sm:$0xf0]  ;;  %v1672_v53 = vld [vmem:[%s2280_s19 + $0x210] sm:$0xf] }
  0x74   : > { %1130 = vmatpush.bf16.msrb.mxu0 %v1409_v60  ;;  %v1578_v60 = vld [vmem:[%s2280_s19 + $0x170] sm:$0xf0]  ;;  %v1985_v54 = vld [vmem:[%s2280_s19 + $0x22c] sm:$0xf0] }
  0x75   : > { %1158 = vmatpush.bf16.msrb.mxu2 %v1413_v1  ;;  %v1544_v1 = vld [vmem:[%s2280_s19 + $0x110] sm:$0xf]  ;;  %v1581_v3 = vor.u32 %v1957_v59, %v1578_v60  ;;  %v1706_v48 = vld [vmem:[%s2280_s19 + $0x270] sm:$0xf0] }
  0x76   : > { %1144 = vmatpush.bf16.msrb.mxu1 %v1665_v0  ;;  %1172 = vmatpush.bf16.msrb.mxu3 %v1669_v4  ;;  %v1833_v0 = vor.u32 %v2025_v58, %v1832_v57  ;;  %v1837_v4 = vor.u32 %v2021_v61, %v1834_v62  ;;  %v1917_v57 = vld [vmem:[%s2280_s19 + $0x14] sm:$0xf]  ;;  %v1648_v61 = vld [vmem:[%s2280_s19 + $0x1d8] sm:$0xf] }
  0x77   : > { %v1418_v58 = vld [vmem:[%s2280_s19 + $0x30] sm:$0xf0]  ;;  %v1978_v62 = vld [vmem:[%s2280_s19 + $0x1f4] sm:$0xf0] }
  0x78   : > { %v1981_v59 = vld [vmem:[%s2280_s19 + $0x214] sm:$0xf] }
  0x79   : > { %v1674_v60 = vld [vmem:[%s2280_s19 + $0x230] sm:$0xf0] }
  0xa6   : > { %v278_v5 = vpop.permute.xlu1 %277  ;;  %v262_v6 = vpop.permute.xlu0 %261 }
  0xa7   : > { %v269_v9 = vsub.f32 %v253_v7, %v262_v6  ;;  %v270_v10 = vsub.f32 %v254_v8, %v262_v6  ;;  %v2017_v6 = vld [vmem:[%s2280_s19 + $0x32c] sm:$0xf0]  ;;  %v1949_v7 = vld [vmem:[%s2280_s19 + $0x114] sm:$0xf] }
  0xa8   : > { %v1546_v8 = vld [vmem:[%s2280_s19 + $0x130] sm:$0xf0] }
  0xa9   : > { %v285_v13 = vmul.f32 %v278_v5, %v269_v9  ;;  %v286_v14 = vmul.f32 %v278_v5, %v270_v10  ;;  %v1800_v5 = vld [vmem:[%s2280_s19 + $0x310] sm:$0xf]  ;;  %v2013_v9 = vld [vmem:[%s2280_s19 + $0x314] sm:$0xf] }
  0xaa   : > { %v1802_v10 = vld [vmem:[%s2280_s19 + $0x330] sm:$0xf0] }
  0xab   : > { %v289_v19 = vmax.f32 %v285_v13, 0.0  ;;  %v290_v20 = vmax.f32 %v286_v14, 0.0  ;;  %v1512_v13 = vld [vmem:[%s2280_s19 + $0xd0] sm:$0xf] }
  0xac   : > { %v1945_v14 = vld [vmem:[%s2280_s19 + $0xec] sm:$0xf0] }
  0xad   : > { %v293_v32 = vmin.f32 %v289_v19, 1.0  ;;  %v294_v33 = vmin.f32 %v290_v20, 1.0  ;;  %v1941_v19 = vld [vmem:[%s2280_s19 + $0xd4] sm:$0xf]  ;;  %v1513_v23 = vor.u32 %v1945_v14, %v1512_v13 }
  0xae   : > { %v283_v18 = vpop.permute.xlu1 %282  ;;  %v1514_v20 = vld [vmem:[%s2280_s19 + $0xf0] sm:$0xf0] }
  0xaf   : > { %v267_v15 = vpop.permute.xlu0 %266  ;;  %v1517_v27 = vor.u32 %v1941_v19, %v1514_v20  ;;  %v2030_v19 = vld [vmem:[%s2280_s19 + $0x39c] sm:$0xf] }
  0xb0   : > { %v271_v16 = vsub.f32 %v255_v11, %v267_v15  ;;  %v272_v17 = vsub.f32 %v256_v12, %v267_v15  ;;  %v1545_v11 = vor.u32 %v1953_v2, %v1544_v1  ;;  %v1801_v12 = vor.u32 %v2017_v6, %v1800_v5  ;;  %v1974_v1 = vld [vmem:[%s2280_s19 + $0x1dc] sm:$0xf] }
  0xb1   : > { %v1549_v15 = vor.u32 %v1949_v7, %v1546_v8  ;;  %v2038_v5 = vld [vmem:[%s2280_s19 + $0x3dc] sm:$0xf]  ;;  %v1421_v7 = vor.u32 %v1917_v57, %v1418_v58  ;;  %v1677_v8 = vor.u32 %v1981_v59, %v1674_v60 }
  0xb2   : > { %v287_v21 = vmul.f32 %v283_v18, %v271_v16  ;;  %v288_v22 = vmul.f32 %v283_v18, %v272_v17  ;;  %v1805_v16 = vor.u32 %v2013_v9, %v1802_v10  ;;  %v1768_v17 = vld [vmem:[%s2280_s19 + $0x2d0] sm:$0xf]  ;;  %v1906_v6 = vld [vmem:[%s2280_s19 + $0x3f8] sm:$0xf0]  ;;  %v1649_v9 = vor.u32 %v1978_v62, %v1648_v61  ;;  %v1488_v61 = vld [vmem:[%s2280_s19 + $0x98] sm:$0xf] }
  0xb3   : > { %v2009_v18 = vld [vmem:[%s2280_s19 + $0x2ec] sm:$0xf0]  ;;  %v1909_v14 = vor.u32 %v2038_v5, %v1906_v6  ;;  %v1874_v20 = vld [vmem:[%s2280_s19 + $0x3b8] sm:$0xf0]  ;;  %v1938_v62 = vld [vmem:[%s2280_s19 + $0xb4] sm:$0xf0] }
  0xb4   : > { %v291_v25 = vmax.f32 %v287_v21, 0.0  ;;  %v292_v26 = vmax.f32 %v288_v22, 0.0  ;;  %v2005_v21 = vld [vmem:[%s2280_s19 + $0x2d4] sm:$0xf]  ;;  %v1769_v24 = vor.u32 %v2009_v18, %v1768_v17  ;;  %v1966_v17 = vld [vmem:[%s2280_s19 + $0x19c] sm:$0xf] }
  0xb5   : > { %v1770_v22 = vld [vmem:[%s2280_s19 + $0x2f0] sm:$0xf0]  ;;  %v1618_v18 = vld [vmem:[%s2280_s19 + $0x1b8] sm:$0xf0] }
  0xb6   : > { %v295_v34 = vmin.f32 %v291_v25, 1.0  ;;  %v296_v35 = vmin.f32 %v292_v26, 1.0  ;;  %v1480_v25 = vld [vmem:[%s2280_s19 + $0x90] sm:$0xf]  ;;  %v1773_v28 = vor.u32 %v2005_v21, %v1770_v22  ;;  %v2006_v57 = vld [vmem:[%s2280_s19 + $0x2dc] sm:$0xf] }
  0xb7   : > { %v1937_v26 = vld [vmem:[%s2280_s19 + $0xac] sm:$0xf0]  ;;  %v1778_v58 = vld [vmem:[%s2280_s19 + $0x2f8] sm:$0xf0] }
  0xb8   : > { %v2442_v37 = vpack.c.bf16 %v295_v34, %v293_v32  ;;  %v2444_v38 = vpack.c.bf16 %v296_v35, %v294_v33  ;;  %v1482_v32 = vld [vmem:[%s2280_s19 + $0xb0] sm:$0xf0]  ;;  %v1481_v35 = vor.u32 %v1937_v26, %v1480_v25  ;;  %v1621_v25 = vor.u32 %v1966_v17, %v1618_v18  ;;  %v1998_v5 = vld [vmem:[%s2280_s19 + $0x29c] sm:$0xf] }
  0xb9   : > { %v1997_v33 = vld [vmem:[%s2280_s19 + $0x294] sm:$0xf]  ;;  %v1485_v41 = vor.u32 %v1933_v31, %v1482_v32  ;;  %v1877_v26 = vor.u32 %v2030_v19, %v1874_v20  ;;  %v2022_v31 = vld [vmem:[%s2280_s19 + $0x35c] sm:$0xf] }
  0xba   : > { %1075 = vmatmul.bf16.vlgmr.msra.gmra.mxu0 %v2442_v37  ;;  %1089 = vmatmul.bf16.vlgmr.msra.gmra.mxu1 %v2444_v38  ;;  %v1738_v34 = vld [vmem:[%s2280_s19 + $0x2b0] sm:$0xf0]  ;;  %v1842_v32 = vld [vmem:[%s2280_s19 + $0x378] sm:$0xf0] }
  0xbb   : > { %1103 = vmatmul.bf16.vlgmr.msra.gmra.mxu2 %v2442_v37  ;;  %1117 = vmatmul.bf16.vlgmr.msra.gmra.mxu3 %v2444_v38  ;;  %v1741_v42 = vor.u32 %v1997_v33, %v1738_v34  ;;  %v1746_v6 = vld [vmem:[%s2280_s19 + $0x2b8] sm:$0xf0] }
  0xbc   : > { %1179 = vmatpush.bf16.msra.mxu0 %v1641_v39  ;;  %1193 = vmatpush.bf16.msra.mxu1 %v1897_v40  ;;  %v1448_v39 = vld [vmem:[%s2280_s19 + $0x50] sm:$0xf]  ;;  %v1990_v17 = vld [vmem:[%s2280_s19 + $0x25c] sm:$0xf] }
  0xbd   : > { %1207 = vmatpush.bf16.msra.mxu2 %v1645_v43  ;;  %1221 = vmatpush.bf16.msra.mxu3 %v1901_v44  ;;  %v1929_v40 = vld [vmem:[%s2280_s19 + $0x6c] sm:$0xf0]  ;;  %v1714_v18 = vld [vmem:[%s2280_s19 + $0x278] sm:$0xf0] }
  0xbe   : > { %v1704_v43 = vld [vmem:[%s2280_s19 + $0x250] sm:$0xf]  ;;  %v1449_v50 = vor.u32 %v1929_v40, %v1448_v39  ;;  %v1589_v39 = vor.u32 %v1958_v29, %v1586_v30  ;;  %v1845_v40 = vor.u32 %v2022_v31, %v1842_v32  ;;  %v1982_v29 = vld [vmem:[%s2280_s19 + $0x21c] sm:$0xf] }
  0xbf   : > { %v1993_v44 = vld [vmem:[%s2280_s19 + $0x26c] sm:$0xf0]  ;;  %v1682_v30 = vld [vmem:[%s2280_s19 + $0x238] sm:$0xf0] }
  0xc0   : > { %1180 = vmatpush.bf16.msra.mxu0 %v1609_v51  ;;  %1194 = vmatpush.bf16.msra.mxu1 %v1865_v52  ;;  %v1705_v51 = vor.u32 %v1993_v44, %v1704_v43  ;;  %v1921_v52 = vld [vmem:[%s2280_s19 + $0x2c] sm:$0xf0]  ;;  %v1950_v43 = vld [vmem:[%s2280_s19 + $0x11c] sm:$0xf] }
  0xc1   : > { %1208 = vmatpush.bf16.msra.mxu2 %v1613_v55  ;;  %1222 = vmatpush.bf16.msra.mxu3 %v1869_v56  ;;  %v1453_v55 = vor.u32 %v1925_v45, %v1450_v46  ;;  %v1709_v56 = vor.u32 %v1989_v47, %v1706_v48  ;;  %v1417_v2 = vor.u32 %v1921_v52, %v1416_v49  ;;  %v1554_v44 = vld [vmem:[%s2280_s19 + $0x138] sm:$0xf0]  ;;  %v1520_v49 = vld [vmem:[%s2280_s19 + $0xd8] sm:$0xf] }
  0xc2   : > { %v2014_v45 = vld [vmem:[%s2280_s19 + $0x31c] sm:$0xf] }
  0xc3   : > { %v1810_v46 = vld [vmem:[%s2280_s19 + $0x338] sm:$0xf0] }
  0xc4   : > { %1181 = vmatpush.bf16.msra.mxu0 %v1577_v63  ;;  %1195 = vmatpush.bf16.msra.mxu1 %v1833_v0  ;;  %v1904_v63 = vld [vmem:[%s2280_s19 + $0x3d8] sm:$0xf]  ;;  %v1813_v52 = vor.u32 %v2014_v45, %v1810_v46 }
  0xc5   : > { %1209 = vmatpush.bf16.msra.mxu2 %v1581_v3  ;;  %1223 = vmatpush.bf16.msra.mxu3 %v1837_v4  ;;  %v2042_v0 = vld [vmem:[%s2280_s19 + $0x3f4] sm:$0xf0]  ;;  %v1673_v3 = vor.u32 %v1985_v54, %v1672_v53  ;;  %v1650_v4 = vld [vmem:[%s2280_s19 + $0x1f8] sm:$0xf0] }
  0xc6   : > { %v1905_v10 = vor.u32 %v2042_v0, %v1904_v63  ;;  %v1653_v13 = vor.u32 %v1974_v1, %v1650_v4  ;;  %v1776_v53 = vld [vmem:[%s2280_s19 + $0x2d8] sm:$0xf]  ;;  %v1781_v0 = vor.u32 %v2006_v57, %v1778_v58  ;;  %v1490_v4 = vld [vmem:[%s2280_s19 + $0xb8] sm:$0xf0] }
  0xc7   : > { %v2010_v54 = vld [vmem:[%s2280_s19 + $0x2f4] sm:$0xf0] }
  0xc8   : > { %1182 = vmatpush.bf16.msra.mxu0 %v1545_v11  ;;  %1196 = vmatpush.bf16.msra.mxu1 %v1801_v12  ;;  %v1616_v11 = vld [vmem:[%s2280_s19 + $0x198] sm:$0xf]  ;;  %v1777_v60 = vor.u32 %v2010_v54, %v1776_v53 }
  0xc9   : > { %1210 = vmatpush.bf16.msra.mxu2 %v1549_v15  ;;  %1224 = vmatpush.bf16.msra.mxu3 %v1805_v16  ;;  %v1970_v12 = vld [vmem:[%s2280_s19 + $0x1b4] sm:$0xf0] }
  0xca   : > { %1131 = vmatmul.bf16.vlgmr.msrb.gmra.mxu0 %v2442_v37  ;;  %1145 = vmatmul.bf16.vlgmr.msrb.gmra.mxu1 %v2444_v38  ;;  %v1872_v15 = vld [vmem:[%s2280_s19 + $0x398] sm:$0xf]  ;;  %v1617_v21 = vor.u32 %v1970_v12, %v1616_v11  ;;  %v1749_v12 = vor.u32 %v1998_v5, %v1746_v6 }
  0xcb   : > { %1159 = vmatmul.bf16.vlgmr.msrb.gmra.mxu2 %v2442_v37  ;;  %1173 = vmatmul.bf16.vlgmr.msrb.gmra.mxu3 %v2444_v38  ;;  %v2034_v16 = vld [vmem:[%s2280_s19 + $0x3b4] sm:$0xf0] }
  0xcc   : > { %1183 = vmatpush.bf16.msra.mxu0 %v1513_v23  ;;  %1197 = vmatpush.bf16.msra.mxu1 %v1769_v24  ;;  %v1873_v22 = vor.u32 %v2034_v16, %v1872_v15  ;;  %v1584_v23 = vld [vmem:[%s2280_s19 + $0x158] sm:$0xf]  ;;  %v1926_v15 = vld [vmem:[%s2280_s19 + $0x5c] sm:$0xf] }
  0xcd   : > { %1211 = vmatpush.bf16.msra.mxu2 %v1517_v27  ;;  %1225 = vmatpush.bf16.msra.mxu3 %v1773_v28  ;;  %v1962_v24 = vld [vmem:[%s2280_s19 + $0x174] sm:$0xf0]  ;;  %v1458_v16 = vld [vmem:[%s2280_s19 + $0x78] sm:$0xf0] }
  0xce   : > { %v1840_v27 = vld [vmem:[%s2280_s19 + $0x358] sm:$0xf]  ;;  %v1585_v33 = vor.u32 %v1962_v24, %v1584_v23  ;;  %v1461_v23 = vor.u32 %v1926_v15, %v1458_v16  ;;  %v1717_v24 = vor.u32 %v1990_v17, %v1714_v18 }
  0xcf   : > { %v2026_v28 = vld [vmem:[%s2280_s19 + $0x374] sm:$0xf0] }
  0xd0   : > { %1184 = vmatpush.bf16.msra.mxu0 %v1481_v35  ;;  %1198 = vmatpush.bf16.msra.mxu1 %v1737_v36  ;;  %v1841_v34 = vor.u32 %v2026_v28, %v1840_v27  ;;  %v1552_v35 = vld [vmem:[%s2280_s19 + $0x118] sm:$0xf]  ;;  %v1918_v27 = vld [vmem:[%s2280_s19 + $0x1c] sm:$0xf] }
  0xd1   : > { %1212 = vmatpush.bf16.msra.mxu2 %v1485_v41  ;;  %1226 = vmatpush.bf16.msra.mxu3 %v1741_v42  ;;  %v1954_v36 = vld [vmem:[%s2280_s19 + $0x134] sm:$0xf0]  ;;  %v1426_v28 = vld [vmem:[%s2280_s19 + $0x38] sm:$0xf0] }
  0xd2   : > { %v1808_v41 = vld [vmem:[%s2280_s19 + $0x318] sm:$0xf]  ;;  %v1553_v47 = vor.u32 %v1954_v36, %v1552_v35 }
  0xd3   : > { %v2018_v42 = vld [vmem:[%s2280_s19 + $0x334] sm:$0xf0] }
  0xd4   : > { %1185 = vmatpush.bf16.msra.mxu0 %v1449_v50  ;;  %1199 = vmatpush.bf16.msra.mxu1 %v1705_v51  ;;  %v1809_v48 = vor.u32 %v2018_v42, %v1808_v41  ;;  %v1946_v50 = vld [vmem:[%s2280_s19 + $0xf4] sm:$0xf0]  ;;  %v1557_v51 = vor.u32 %v1950_v43, %v1554_v44 }
  0xd5   : > { %1213 = vmatpush.bf16.msra.mxu2 %v1453_v55  ;;  %1227 = vmatpush.bf16.msra.mxu3 %v1709_v56  ;;  %v1942_v55 = vld [vmem:[%s2280_s19 + $0xdc] sm:$0xf]  ;;  %v1521_v59 = vor.u32 %v1946_v50, %v1520_v49  ;;  %v1744_v1 = vld [vmem:[%s2280_s19 + $0x298] sm:$0xf] }
  0xd6   : > { %v1522_v56 = vld [vmem:[%s2280_s19 + $0xf8] sm:$0xf0] }
  0xd7   : > { %v1525_v63 = vor.u32 %v1942_v55, %v1522_v56 }
  0xd8   : > { %1186 = vmatpush.bf16.msra.mxu0 %v1417_v2  ;;  %1200 = vmatpush.bf16.msra.mxu1 %v1673_v3  ;;  %v2002_v2 = vld [vmem:[%s2280_s19 + $0x2b4] sm:$0xf0]  ;;  %v1934_v3 = vld [vmem:[%s2280_s19 + $0x9c] sm:$0xf] }
  0xd9   : > { %1214 = vmatpush.bf16.msra.mxu2 %v1421_v7  ;;  %1228 = vmatpush.bf16.msra.mxu3 %v1677_v8  ;;  %v1489_v7 = vor.u32 %v1938_v62, %v1488_v61  ;;  %v1745_v8 = vor.u32 %v2002_v2, %v1744_v1  ;;  %v1493_v11 = vor.u32 %v1934_v3, %v1490_v4 }
  0xdb   : > { %1187 = vmatmul.bf16.vlgmr.msra.gmra.mxu0 %v2442_v37  ;;  %1201 = vmatmul.bf16.vlgmr.msra.gmra.mxu1 %v2444_v38 }
  0xdc   : > { %1235 = vmatpush.bf16.msrb.mxu0 %v1649_v9  ;;  %1249 = vmatpush.bf16.msrb.mxu1 %v1905_v10  ;;  %v1456_v9 = vld [vmem:[%s2280_s19 + $0x58] sm:$0xf] }
  0xdd   : > { %1263 = vmatpush.bf16.msrb.mxu2 %v1653_v13  ;;  %1277 = vmatpush.bf16.msrb.mxu3 %v1909_v14  ;;  %v1930_v10 = vld [vmem:[%s2280_s19 + $0x74] sm:$0xf0] }
  0xde   : > { %1215 = vmatmul.bf16.vlgmr.msra.gmra.mxu2 %v2442_v37  ;;  %1229 = vmatmul.bf16.vlgmr.msra.gmra.mxu3 %v2444_v38  ;;  %v1712_v13 = vld [vmem:[%s2280_s19 + $0x258] sm:$0xf]  ;;  %v1457_v19 = vor.u32 %v1930_v10, %v1456_v9 }
  0xdf   : > { %v1994_v14 = vld [vmem:[%s2280_s19 + $0x274] sm:$0xf0] }
  0xe0   : > { %1236 = vmatpush.bf16.msrb.mxu0 %v1617_v21  ;;  %1250 = vmatpush.bf16.msrb.mxu1 %v1873_v22  ;;  %v1713_v20 = vor.u32 %v1994_v14, %v1712_v13  ;;  %v1424_v21 = vld [vmem:[%s2280_s19 + $0x18] sm:$0xf] }
  0xe1   : > { %1264 = vmatpush.bf16.msrb.mxu2 %v1621_v25  ;;  %1278 = vmatpush.bf16.msrb.mxu3 %v1877_v26  ;;  %v1922_v22 = vld [vmem:[%s2280_s19 + $0x34] sm:$0xf0] }
  0xe2   : > { %v1680_v25 = vld [vmem:[%s2280_s19 + $0x218] sm:$0xf]  ;;  %v1425_v31 = vor.u32 %v1922_v22, %v1424_v21 }
  0xe3   : > { %v1986_v26 = vld [vmem:[%s2280_s19 + $0x234] sm:$0xf0] }
  0xe4   : > { %1237 = vmatpush.bf16.msrb.mxu0 %v1585_v33  ;;  %1251 = vmatpush.bf16.msrb.mxu1 %v1841_v34  ;;  %v1681_v32 = vor.u32 %v1986_v26, %v1680_v25  ;;  %v1429_v33 = vor.u32 %v1918_v27, %v1426_v28  ;;  %v1685_v34 = vor.u32 %v1982_v29, %v1682_v30 }
  0xe5   : > { %1265 = vmatpush.bf16.msrb.mxu2 %v1589_v39  ;;  %1279 = vmatpush.bf16.msrb.mxu3 %v1845_v40 }
  0xe8   : > { %1238 = vmatpush.bf16.msrb.mxu0 %v1553_v47  ;;  %1252 = vmatpush.bf16.msrb.mxu1 %v1809_v48 }
  0xe9   : > { %1266 = vmatpush.bf16.msrb.mxu2 %v1557_v51  ;;  %1280 = vmatpush.bf16.msrb.mxu3 %v1813_v52 }
  0xec   : > { %1239 = vmatpush.bf16.msrb.mxu0 %v1521_v59  ;;  %1253 = vmatpush.bf16.msrb.mxu1 %v1777_v60 }
  0xed   : > { %1267 = vmatpush.bf16.msrb.mxu2 %v1525_v63  ;;  %1281 = vmatpush.bf16.msrb.mxu3 %v1781_v0 }
  0xf0   : > { %1240 = vmatpush.bf16.msrb.mxu0 %v1489_v7  ;;  %1254 = vmatpush.bf16.msrb.mxu1 %v1745_v8 }
  0xf1   : > { %1268 = vmatpush.bf16.msrb.mxu2 %v1493_v11  ;;  %1282 = vmatpush.bf16.msrb.mxu3 %v1749_v12 }
  0xf4   : > { %1241 = vmatpush.bf16.msrb.mxu0 %v1457_v19  ;;  %1255 = vmatpush.bf16.msrb.mxu1 %v1713_v20 }
  0xf5   : > { %1269 = vmatpush.bf16.msrb.mxu2 %v1461_v23  ;;  %1283 = vmatpush.bf16.msrb.mxu3 %v1717_v24 }
  0xf8   : > { %1242 = vmatpush.bf16.msrb.mxu0 %v1425_v31  ;;  %1256 = vmatpush.bf16.msrb.mxu1 %v1681_v32 }
  0xf9   : > { %1270 = vmatpush.bf16.msrb.mxu2 %v1429_v33  ;;  %1284 = vmatpush.bf16.msrb.mxu3 %v1685_v34 }
  0xfb   : > { %1243 = vmatmul.bf16.vlgmr.msrb.gmra.mxu0 %v2442_v37  ;;  %1257 = vmatmul.bf16.vlgmr.msrb.gmra.mxu1 %v2444_v38 }
  0xfc   : > { %1271 = vmatmul.bf16.vlgmr.msrb.gmra.mxu2 %v2442_v37  ;;  %1285 = vmatmul.bf16.vlgmr.msrb.gmra.mxu3 %v2444_v38 }
 0x137   : > { %v1076_v35 = vpop.f32.mrf.mxu0  ;;  %v1090_v36 = vpop.f32.mrf.mxu1 }
 0x138   : > { %v1091_v39 = vadd.f32 %v1090_v36, %v1076_v35 }
 0x13a   : > { %1291 = vst [vmem:[%s2586_s6] sm:$0xff] %v1091_v39 }
 0x13e   : > { %v1104_v40 = vpop.f32.mrf.mxu2  ;;  %v1118_v41 = vpop.f32.mrf.mxu3 }
 0x13f   : > { %v1119_v37 = vadd.f32 %v1118_v41, %v1104_v40  ;;  %v1078_v42 = vpop.f32.mrf.mxu0  ;;  %v1092_v38 = vpop.f32.mrf.mxu1 }
 0x140   : > { %v1093_v43 = vadd.f32 %v1092_v38, %v1078_v42 }
 0x141   : > { %1292 = vst [vmem:[%s2586_s6 + $0x8] sm:$0xff] %v1119_v37 }
 0x142   : > { %1299 = vst [vmem:[%s2586_s6 + $0x40] sm:$0xff] %v1093_v43 }
 0x146   : > { %v1106_v44 = vpop.f32.mrf.mxu2  ;;  %v1120_v45 = vpop.f32.mrf.mxu3 }
 0x147   : > { %v1121_v46 = vadd.f32 %v1120_v45, %v1106_v44  ;;  %v1132_v47 = vpop.f32.mrf.mxu0  ;;  %v1146_v48 = vpop.f32.mrf.mxu1 }
 0x148   : > { %v1147_v49 = vadd.f32 %v1146_v48, %v1132_v47 }
 0x149   : > { %1300 = vst [vmem:[%s2586_s6 + $0x48] sm:$0xff] %v1121_v46 }
 0x14a   : > { %1293 = vst [vmem:[%s2586_s6 + $0x10] sm:$0xff] %v1147_v49 }
 0x14e   : > { %v1160_v50 = vpop.f32.mrf.mxu2  ;;  %v1174_v51 = vpop.f32.mrf.mxu3 }
 0x14f   : > { %v1175_v52 = vadd.f32 %v1174_v51, %v1160_v50  ;;  %v1134_v53 = vpop.f32.mrf.mxu0  ;;  %v1148_v54 = vpop.f32.mrf.mxu1 }
 0x150   : > { %v1149_v55 = vadd.f32 %v1148_v54, %v1134_v53 }
 0x151   : > { %1294 = vst [vmem:[%s2586_s6 + $0x18] sm:$0xff] %v1175_v52 }
 0x152   : > { %1301 = vst [vmem:[%s2586_s6 + $0x50] sm:$0xff] %v1149_v55 }
 0x156   : > { %v1162_v56 = vpop.f32.mrf.mxu2  ;;  %v1176_v57 = vpop.f32.mrf.mxu3 }
 0x157   : > { %v1177_v58 = vadd.f32 %v1176_v57, %v1162_v56 }
 0x158   : > { %v1188_v59 = vpop.f32.mrf.mxu0  ;;  %v1202_v60 = vpop.f32.mrf.mxu1 }
 0x159   : > { %1302 = vst [vmem:[%s2586_s6 + $0x58] sm:$0xff] %v1177_v58  ;;  %v1203_v61 = vadd.f32 %v1202_v60, %v1188_v59 }
 0x15b   : > { %1295 = vst [vmem:[%s2586_s6 + $0x20] sm:$0xff] %v1203_v61 }
 0x160   : > { %v1190_v1 = vpop.f32.mrf.mxu0  ;;  %v1204_v2 = vpop.f32.mrf.mxu1 }
 0x161   : > { %v1216_v62 = vpop.f32.mrf.mxu2  ;;  %v1230_v63 = vpop.f32.mrf.mxu3  ;;  %v1205_v3 = vadd.f32 %v1204_v2, %v1190_v1 }
 0x162   : > { %v1231_v0 = vadd.f32 %v1230_v63, %v1216_v62 }
 0x163   : > { %1303 = vst [vmem:[%s2586_s6 + $0x60] sm:$0xff] %v1205_v3 }
 0x164   : > { %1296 = vst [vmem:[%s2586_s6 + $0x28] sm:$0xff] %v1231_v0 }
 0x169   : > { %v1218_v4 = vpop.f32.mrf.mxu2  ;;  %v1232_v5 = vpop.f32.mrf.mxu3 }
 0x16a   : > { %v1233_v6 = vadd.f32 %v1232_v5, %v1218_v4 }
 0x16c   : > { %1304 = vst [vmem:[%s2586_s6 + $0x68] sm:$0xff] %v1233_v6 }
 0x178   : > { %v1244_v7 = vpop.f32.mrf.mxu0  ;;  %v1258_v8 = vpop.f32.mrf.mxu1 }
 0x179   : > { %v1259_v9 = vadd.f32 %v1258_v8, %v1244_v7 }
 0x17b   : > { %1297 = vst [vmem:[%s2586_s6 + $0x30] sm:$0xff] %v1259_v9 }
 0x17f   : > { %v1272_v10 = vpop.f32.mrf.mxu2  ;;  %v1286_v11 = vpop.f32.mrf.mxu3 }
 0x180   : > { %v1287_v12 = vadd.f32 %v1286_v11, %v1272_v10  ;;  %v1246_v13 = vpop.f32.mrf.mxu0  ;;  %v1260_v14 = vpop.f32.mrf.mxu1 }
 0x181   : > { %v1261_v15 = vadd.f32 %v1260_v14, %v1246_v13 }
 0x182   : > { %1298 = vst [vmem:[%s2586_s6 + $0x38] sm:$0xff] %v1287_v12 }
 0x183   : > { %1305 = vst [vmem:[%s2586_s6 + $0x70] sm:$0xff] %v1261_v15 }
 0x187   : > { %v1274_v16 = vpop.f32.mrf.mxu2  ;;  %v1288_v17 = vpop.f32.mrf.mxu3 }
 0x188   : > { %v1289_v18 = vadd.f32 %v1288_v17, %v1274_v16 }
 0x18a   : > { %1306 = vst [vmem:[%s2586_s6 + $0x78] sm:$0xff] %v1289_v18 }
 0x18b PF: > { %p23_p7 = scmp.ge.s32.totalorder %s2225_s0, 10   ;;  %s2627_s22 = smov %s2162_s23 }
 0x18c   : > { %s2628_s23 = smov %s2166_s24  ;;  %s2629_s24 = smov %s2247_s11 }
 0x18d   : > { %s2630_s25 = smov %s2225_s0  ;;  %25 = sbr.rel (!%p23_p7) target bundleno = 9 (0x9), region = 79 }
 0x192   :  { %1328 = vsyncpa [#allocation5], 1 }
 0x193   :  { %1330 = vsyncpa [#allocation5 + $0x1], 1 }

</bundles_post_ra>
